<compile_context>
chip_gen: v5e
topology: v5e:2x2
jax: 0.10.0
libtpu: 0.0.40
codegen_flags: <defaults>
</compile_context>

<pallas_src>
import math

import jax
import jax.numpy as jnp
from jax.experimental import pallas as pl
from jax.experimental.pallas import tpu as pltpu

EPS = 1e-5
NEG_SLOPE = 0.1
_VMEM_LIMIT = 48 * 1024 * 1024       # per-kernel scoped VMEM (< v7x 64 MiB physical)
_MM_BUDGET = 26 * 1024 * 1024        # target for matmul double-buffered blocks
_BN_BLOCK_BYTES = 3 * 1024 * 1024    # target bytes per BN row-block (f32)


def _round_up(x, m):
    return (x + m - 1) // m * m


# -----------------------------------------------------------------------------
# Pallas kernel 1: conv matmul (bf16 MXU, f32 acc) + per-tile channel statistics
# -----------------------------------------------------------------------------
def _conv_mm_kernel(a_ref, b_ref, o_ref, sum_ref, sq_ref):
    acc = jnp.dot(a_ref[...], b_ref[...], preferred_element_type=jnp.float32)
    o_ref[...] = acc
    sum_ref[...] = jnp.sum(acc, axis=0, keepdims=True)[None]          # (1, 1, N)
    sq_ref[...] = jnp.sum(acc * acc, axis=0, keepdims=True)[None]     # (1, 1, N)


def _pick_tm(M, K, N, budget=_MM_BUDGET):
    """Largest M-tile (divisor of M) whose double-buffered A/O blocks plus the
    VMEM-resident (double-buffered) bf16 weights stay under the budget."""
    b_bytes = 2 * K * N * 2                           # bf16 weights, 2 buffers
    divisors = [c for c in (512, 256, 128, 64, 32, 16, 8) if M % c == 0]
    for cand in divisors:
        a_bytes = 2 * cand * K * 2                    # bf16 A block, 2 buffers
        o_bytes = 2 * cand * N * 4                    # f32 output block, 2 buffers
        if b_bytes + a_bytes + o_bytes <= budget:
            return cand
    return divisors[-1] if divisors else None


def pallas_conv_matmul(a, b):
    """a: (M, K) patches, b: (K, N) weights.

    Returns (conv (M, N) f32, per-channel sum (N,), per-channel sum-of-squares (N,)).
    """
    M, K = a.shape
    Kb, N = b.shape
    assert K == Kb
    a16 = a.astype(jnp.bfloat16)
    b16 = b.astype(jnp.bfloat16)

    Mp = M
    tm = _pick_tm(M, K, N)
    if tm is None:                                    # M has no multiple-of-8 divisor
        if M <= 1024:
            tm = M                                    # single block (full-dim exception)
        else:
            Mp = _round_up(M, 8)
            a16 = jnp.pad(a16, ((0, Mp - M), (0, 0)))  # zero rows: stats unaffected
            tm = _pick_tm(Mp, K, N) or 8
    gm = Mp // tm

    conv, tsum, tsq = pl.pallas_call(
        _conv_mm_kernel,
        out_shape=(
            jax.ShapeDtypeStruct((Mp, N), jnp.float32),
            jax.ShapeDtypeStruct((gm, 1, N), jnp.float32),
            jax.ShapeDtypeStruct((gm, 1, N), jnp.float32),
        ),
        grid_spec=pltpu.PrefetchScalarGridSpec(
            num_scalar_prefetch=0,
            grid=(gm,),
            in_specs=[
                pl.BlockSpec((tm, K), lambda i: (i, 0)),
                pl.BlockSpec((K, N), lambda i: (0, 0)),     # weights resident across M
            ],
            out_specs=[
                pl.BlockSpec((tm, N), lambda i: (i, 0)),
                pl.BlockSpec((1, 1, N), lambda i: (i, 0, 0)),
                pl.BlockSpec((1, 1, N), lambda i: (i, 0, 0)),
            ],
        ),
        compiler_params=pltpu.CompilerParams(
            dimension_semantics=("parallel",),
            vmem_limit_bytes=_VMEM_LIMIT),
    )(a16, b16)

    if Mp != M:
        conv = conv[:M]
    sums = jnp.sum(tsum[:, 0, :], axis=0)
    sumsq = jnp.sum(tsq[:, 0, :], axis=0)
    return conv, sums, sumsq


# -----------------------------------------------------------------------------
# Pallas kernel 2: fused (folded) BatchNorm + LeakyReLU (+ residual add)
# -----------------------------------------------------------------------------
def _bn_lrelu_kernel(x_ref, sc_ref, sh_ref, o_ref):
    y = x_ref[...] * sc_ref[...] + sh_ref[...]
    o_ref[...] = jnp.where(y > 0, y, NEG_SLOPE * y)


def _bn_lrelu_res_kernel(x_ref, sc_ref, sh_ref, r_ref, o_ref):
    y = x_ref[...] * sc_ref[...] + sh_ref[...]
    y = jnp.where(y > 0, y, NEG_SLOPE * y)
    o_ref[...] = y + r_ref[...]


def _bn_call(x, scale, shift, residual):
    M, C = x.shape
    row_budget = max(8, _BN_BLOCK_BYTES // (4 * C))
    divisors = [c for c in (4096, 2048, 1024, 512, 256, 128, 64, 32, 16, 8)
                if c <= row_budget and M % c == 0]
    pad = 0
    if divisors:
        tm = divisors[0]
    elif M <= max(row_budget, 1024):
        tm = M                                        # single block (full-dim exception)
    else:
        tm = max(c for c in (512, 256, 128, 64, 32, 16, 8) if c <= row_budget)
        pad = _round_up(M, tm) - M
        x = jnp.pad(x, ((0, pad), (0, 0)))
        if residual is not None:
            residual = jnp.pad(residual, ((0, pad), (0, 0)))
    Mp = M + pad
    gm = Mp // tm

    row_spec = pl.BlockSpec((tm, C), lambda i: (i, 0))
    vec_spec = pl.BlockSpec((1, C), lambda i: (0, 0))
    if residual is None:
        kernel = _bn_lrelu_kernel
        operands = (x, scale, shift)
        in_specs = [row_spec, vec_spec, vec_spec]
    else:
        kernel = _bn_lrelu_res_kernel
        operands = (x, scale, shift, residual)
        in_specs = [row_spec, vec_spec, vec_spec, row_spec]

    out = pl.pallas_call(
        kernel,
        out_shape=jax.ShapeDtypeStruct((Mp, C), jnp.float32),
        grid_spec=pltpu.PrefetchScalarGridSpec(
            num_scalar_prefetch=0,
            grid=(gm,),
            in_specs=in_specs,
            out_specs=row_spec,
        ),
        compiler_params=pltpu.CompilerParams(
            dimension_semantics=("parallel",),
            vmem_limit_bytes=_VMEM_LIMIT),
    )(*operands)
    return out[:M] if pad else out


def pallas_bn_lrelu(x, scale, shift, residual=None):
    """Fused y = x*scale + shift, LeakyReLU(0.1), optional residual add.

    For Cout < 128 the contiguous (M, C) buffer is re-viewed as (M*C/128, 128) so
    stores are lane-dense (avoids masked partial stores for the 32/64-wide layers).
    """
    M, C = x.shape
    scale2 = scale.reshape(1, C).astype(jnp.float32)
    shift2 = shift.reshape(1, C).astype(jnp.float32)
    if C < 128 and 128 % C == 0 and (M * C) % 128 == 0:
        reps = 128 // C
        xr = x.reshape(M * C // 128, 128)
        rr = residual.reshape(M * C // 128, 128) if residual is not None else None
        out = _bn_call(xr, jnp.tile(scale2, (1, reps)), jnp.tile(shift2, (1, reps)), rr)
        return out.reshape(M, C)
    return _bn_call(x, scale2, shift2, residual)


# -----------------------------------------------------------------------------
# im2col glue (plain JAX) and conv-block forward
# -----------------------------------------------------------------------------
def im2col(x, ksize, stride):
    """x: (N, H, W, C) -> patches (N*Ho*Wo, ksize*ksize*C), plus (N, Ho, Wo)."""
    N, H, W, C = x.shape
    if ksize == 1:
        return x.reshape(N * H * W, C), (N, H, W)
    pad = 1
    Ho = (H + 2 * pad - ksize) // stride + 1
    Wo = (W + 2 * pad - ksize) // stride + 1
    xp = jnp.pad(x, ((0, 0), (pad, pad), (pad, pad), (0, 0)))
    cols = []
    for ky in range(ksize):
        for kx in range(ksize):
            cols.append(xp[:, ky:ky + (Ho - 1) * stride + 1:stride,
                           kx:kx + (Wo - 1) * stride + 1:stride, :])
    patches = jnp.concatenate(cols, axis=-1)          # ordering (ky, kx, c)
    return patches.reshape(N * Ho * Wo, ksize * ksize * C), (N, Ho, Wo)


def weight_to_2d(w):
    """PyTorch conv weight (Cout, Cin, KH, KW) -> (KH*KW*Cin, Cout)."""
    Cout, Cin, KH, KW = w.shape
    return jnp.transpose(w, (2, 3, 1, 0)).reshape(KH * KW * Cin, Cout)


def conv_bn_lrelu(x_nhwc, p, stride, residual=None):
    """Conv2d(bias=False) + BatchNorm2d (batch stats) + LeakyReLU(0.1) (+ residual)."""
    x16 = x_nhwc.astype(jnp.bfloat16)       # bf16 patches: MXU-native, half the HBM bytes
    patches, (N, Ho, Wo) = im2col(x16, p["k"], stride)
    w2d = weight_to_2d(p["w"]).astype(jnp.bfloat16)
    conv, sums, sumsq = pallas_conv_matmul(patches, w2d)
    Cout = w2d.shape[1]
    M = N * Ho * Wo

    mean = sums / M                                   # train-mode batch statistics
    var = jnp.maximum(sumsq / M - mean * mean, 0.0)   # biased variance (PyTorch norm)
    invstd = jax.lax.rsqrt(var + EPS)
    scale = invstd * p["gamma"]                       # folded BN: y = x*scale + shift
    shift = p["beta"] - mean * scale

    res2d = residual.reshape(M, Cout) if residual is not None else None
    out = pallas_bn_lrelu(conv, scale, shift, res2d)
    return out.reshape(N, Ho, Wo, Cout)


def residual_block(x, p1, p2):
    y = conv_bn_lrelu(x, p1, stride=1)                 # 1x1 squeeze
    y = conv_bn_lrelu(y, p2, stride=1, residual=x)     # 3x3 expand, += residual
    return y


# -----------------------------------------------------------------------------
# Parameter init (deterministic, mirrors DarkNet.__init__)
# -----------------------------------------------------------------------------
def make_conv_bn(key, cin, cout, ksize):
    n = ksize * ksize * cout
    w = jax.random.normal(key, (cout, cin, ksize, ksize),
                          dtype=jnp.float32) * math.sqrt(2.0 / n)
    return dict(w=w, gamma=jnp.ones((cout,), jnp.float32),
                beta=jnp.zeros((cout,), jnp.float32), k=ksize)


def init_darknet(key, repeat_times):
    n_keys = 1 + sum(1 + 2 * r for r in repeat_times)
    keys = list(jax.random.split(key, n_keys))
    ki = iter(keys)
    params = {"conv1": make_conv_bn(next(ki), 3, 32, 3), "layers": []}
    in_ch = 32
    channel_spec = [[32, 64], [64, 128], [128, 256], [256, 512], [512, 1024]]
    for channels, blocks in zip(channel_spec, repeat_times):
        layer = {"ds": make_conv_bn(next(ki), in_ch, channels[1], 3), "res": []}
        in_ch = channels[1]
        for _ in range(blocks):
            p1 = make_conv_bn(next(ki), in_ch, channels[0], 1)
            p2 = make_conv_bn(next(ki), channels[0], channels[1], 3)
            layer["res"].append((p1, p2))
        params["layers"].append(layer)
    return params


# -----------------------------------------------------------------------------
# Full forward (NCHW in, tuple of NCHW out — matches PyTorch)
# -----------------------------------------------------------------------------
def darknet_forward(params, x_nchw):
    x = jnp.transpose(x_nchw, (0, 2, 3, 1)).astype(jnp.float32)  # -> NHWC
    x = conv_bn_lrelu(x, params["conv1"], stride=1)
    layer_outs = []
    for layer in params["layers"]:
        x = conv_bn_lrelu(x, layer["ds"], stride=2)
        for (p1, p2) in layer["res"]:
            x = residual_block(x, p1, p2)
        layer_outs.append(x)
    out_52, out_26, out_13 = layer_outs[2], layer_outs[3], layer_outs[4]
    to_nchw = lambda t: jnp.transpose(t, (0, 3, 1, 2))
    return to_nchw(out_52), to_nchw(out_26), to_nchw(out_13)


# -----------------------------------------------------------------------------
# Pure-JAX reference (bf16 conv operands to match the MXU precision of the kernel)
# -----------------------------------------------------------------------------
def _ref_conv_bn_lrelu(x, p, stride, residual=None):
    w = jnp.transpose(p["w"], (2, 3, 1, 0)).astype(jnp.bfloat16)  # HWIO
    pad = 1 if p["k"] == 3 else 0
    y = jax.lax.conv_general_dilated(
        x.astype(jnp.bfloat16), w, (stride, stride), ((pad, pad), (pad, pad)),
        dimension_numbers=("NHWC", "HWIO", "NHWC"),
        preferred_element_type=jnp.float32)
    mean = jnp.mean(y, axis=(0, 1, 2))
    var = jnp.var(y, axis=(0, 1, 2))
    y = (y - mean) * jax.lax.rsqrt(var + EPS) * p["gamma"] + p["beta"]
    y = jnp.where(y > 0, y, NEG_SLOPE * y)
    if residual is not None:
        y = y + residual
    return y


def _ref_forward(params, x_nchw):
    x = jnp.transpose(x_nchw, (0, 2, 3, 1)).astype(jnp.float32)
    x = _ref_conv_bn_lrelu(x, params["conv1"], 1)
    outs = []
    for layer in params["layers"]:
        x = _ref_conv_bn_lrelu(x, layer["ds"], 2)
        for (p1, p2) in layer["res"]:
            y = _ref_conv_bn_lrelu(x, p1, 1)
            x = _ref_conv_bn_lrelu(y, p2, 1, residual=x)
        outs.append(x)
    to_nchw = lambda t: jnp.transpose(t, (0, 3, 1, 2))
    return to_nchw(outs[2]), to_nchw(outs[3]), to_nchw(outs[4])


# -----------------------------------------------------------------------------
if __name__ == "__main__":
    key = jax.random.PRNGKey(0)
    k_param, k_input = jax.random.split(key)

    # Small config: repeat_times=[1,1,1,1,1]; input (N=2, C=3, H=64, W=64) so the
    # deepest stage still has >1 spatial position after 5 stride-2 downsamples.
    repeat_times = [1, 1, 1, 1, 1]
    params = init_darknet(k_param, repeat_times)
    x = jax.random.normal(k_input, (2, 3, 64, 64), dtype=jnp.float32)

    out_52, out_26, out_13 = darknet_forward(params, x)
    jax.block_until_ready((out_52, out_26, out_13))

    assert out_52.shape == (2, 256, 8, 8), out_52.shape
    assert out_26.shape == (2, 512, 4, 4), out_26.shape
    assert out_13.shape == (2, 1024, 2, 2), out_13.shape

    # Numerical sanity check against an XLA reference using the same bf16 MXU
    # precision (outputs are BN-normalized, ~unit scale).
    r52, r26, r13 = _ref_forward(params, x)
    max_diff = max(float(jnp.max(jnp.abs(a - b)))
                   for a, b in ((out_52, r52), (out_26, r26), (out_13, r13)))
    assert math.isfinite(max_diff) and max_diff < 1e-1, f"max_diff={max_diff}"

    print("KERNEL_OK")
</pallas_src>

<mosaic_0001>
module attributes {stable_mosaic.version = 11 : i64} {
  func.func @_conv_mm_kernel(%arg0: i32, %arg1: memref<512x27xbf16, #tpu.memory_space<vmem>>, %arg2: memref<27x32xbf16, #tpu.memory_space<vmem>>, %arg3: memref<512x32xf32, #tpu.memory_space<vmem>>, %arg4: memref<1x1x32xf32, #tpu.memory_space<vmem>>, %arg5: memref<1x1x32xf32, #tpu.memory_space<vmem>>) attributes {dimension_semantics = [#tpu.dimension_semantics<parallel>], iteration_bounds = array<i64: 16>, scalar_prefetch = 0 : i64, scratch_operands = 0 : i64, tpu.core_type = #tpu.core_type<tc>, window_params = [{transform_indices = @transform_0, window_bounds = array<i64: 512, 27>}, {pipeline_mode = #tpu.pipeline_mode<synchronous>, transform_indices = @transform_1, window_bounds = array<i64: 27, 32>}, {transform_indices = @transform_2, window_bounds = array<i64: 512, 32>}, {transform_indices = @transform_3, window_bounds = array<i64: 1, 1, 32>}, {transform_indices = @transform_4, window_bounds = array<i64: 1, 1, 32>}]} {
    %c0 = arith.constant 0 : index
    %c0_0 = arith.constant 0 : index
    %0 = vector.load %arg1[%c0, %c0_0] : memref<512x27xbf16, #tpu.memory_space<vmem>>, vector<512x27xbf16>
    %c0_1 = arith.constant 0 : index
    %c0_2 = arith.constant 0 : index
    %1 = vector.load %arg2[%c0_1, %c0_2] : memref<27x32xbf16, #tpu.memory_space<vmem>>, vector<27x32xbf16>
    %cst = arith.constant dense<0.000000e+00> : vector<512x32xf32>
    %2 = tpu.matmul %0, %1, %cst {dimension_numbers = #tpu.dot_dimension_numbers<[1], [0], [0], [1], [0, 0, 1, 1], [], []>} : vector<512x27xbf16>, vector<27x32xbf16>, vector<512x32xf32> -> vector<512x32xf32>
    %c0_3 = arith.constant 0 : index
    %c0_4 = arith.constant 0 : index
    %3 = vector.load %arg3[%c0_3, %c0_4] : memref<512x32xf32, #tpu.memory_space<vmem>>, vector<512x32xf32>
    tpu.vector_store %arg3[%c0_3, %c0_4], %2 {strides = array<i32>} : memref<512x32xf32, #tpu.memory_space<vmem>>, vector<512x32xf32>,
    %cst_5 = arith.constant dense<0.000000e+00> : vector<32xf32>
    %4 = vector.multi_reduction <add>, %2, %cst_5 [0] : vector<512x32xf32> to vector<32xf32>
    %5 = vector.shape_cast %4 : vector<32xf32> to vector<1x32xf32>
    %6 = vector.shape_cast %5 : vector<1x32xf32> to vector<1x1x32xf32>
    %c0_6 = arith.constant 0 : index
    %c0_7 = arith.constant 0 : index
    %c0_8 = arith.constant 0 : index
    %7 = vector.load %arg4[%c0_6, %c0_7, %c0_8] : memref<1x1x32xf32, #tpu.memory_space<vmem>>, vector<1x1x32xf32>
    tpu.vector_store %arg4[%c0_6, %c0_7, %c0_8], %6 {strides = array<i32>} : memref<1x1x32xf32, #tpu.memory_space<vmem>>, vector<1x1x32xf32>,
    %8 = arith.mulf %2, %2 : vector<512x32xf32>
    %cst_9 = arith.constant dense<0.000000e+00> : vector<32xf32>
    %9 = vector.multi_reduction <add>, %8, %cst_9 [0] : vector<512x32xf32> to vector<32xf32>
    %10 = vector.shape_cast %9 : vector<32xf32> to vector<1x32xf32>
    %11 = vector.shape_cast %10 : vector<1x32xf32> to vector<1x1x32xf32>
    %c0_10 = arith.constant 0 : index
    %c0_11 = arith.constant 0 : index
    %c0_12 = arith.constant 0 : index
    %12 = vector.load %arg5[%c0_10, %c0_11, %c0_12] : memref<1x1x32xf32, #tpu.memory_space<vmem>>, vector<1x1x32xf32>
    tpu.vector_store %arg5[%c0_10, %c0_11, %c0_12], %11 {strides = array<i32>} : memref<1x1x32xf32, #tpu.memory_space<vmem>>, vector<1x1x32xf32>,
    return
  }
  func.func @transform_0(%arg0: i32) -> (i32, i32) {
    %c0_i32 = arith.constant 0 : i32
    %c0_i32_0 = arith.constant 0 : i32
    return %arg0, %c0_i32 : i32, i32
  }
  func.func @transform_1(%arg0: i32) -> (i32, i32) {
    %c0_i32 = arith.constant 0 : i32
    %c0_i32_0 = arith.constant 0 : i32
    %c0_i32_1 = arith.constant 0 : i32
    return %c0_i32, %c0_i32_0 : i32, i32
  }
  func.func @transform_2(%arg0: i32) -> (i32, i32) {
    %c0_i32 = arith.constant 0 : i32
    %c0_i32_0 = arith.constant 0 : i32
    return %arg0, %c0_i32 : i32, i32
  }
  func.func @transform_3(%arg0: i32) -> (i32, i32, i32) {
    %c0_i32 = arith.constant 0 : i32
    %c0_i32_0 = arith.constant 0 : i32
    %c0_i32_1 = arith.constant 0 : i32
    return %arg0, %c0_i32, %c0_i32_0 : i32, i32, i32
  }
  func.func @transform_4(%arg0: i32) -> (i32, i32, i32) {
    %c0_i32 = arith.constant 0 : i32
    %c0_i32_0 = arith.constant 0 : i32
    %c0_i32_1 = arith.constant 0 : i32
    return %arg0, %c0_i32, %c0_i32_0 : i32, i32, i32
  }
}

</mosaic_0001>

<bundles_post_ra>
// kernel: tpu_custom_call.1
= control target key start
LH: loop header
LB: loop body
LE: loop exit
PB: predicated region body
PF: predicated region fallthrough
CT: control target
= control target key end

     0   :  { %10 = vsyncpa [#allocation3], 0  ;;  %s2503_s0 = inlined_call_operand.vmem [shape: bf16[8192,27], index: 0, kind: input, shape index: {}]   ;;  %s2504_s1 = inlined_call_operand.hbm [shape: bf16[27,32], index: 1, kind: input, shape index: {}]   ;;  %s2505_s2 = inlined_call_operand.vmem [shape: f32[8192,32], index: 2, kind: output, shape index: {0}]   ;;  %s2506_s3 = inlined_call_operand.hbm [shape: f32[16,1,32], index: 3, kind: output, shape index: {1}]   ;;  %s2507_s4 = inlined_call_operand.hbm [shape: f32[16,1,32], index: 4, kind: output, shape index: {2}]  }
   0x1   :  { %11 = vsyncpa [#allocation4], 0 }
   0x2   :  { %13 = vsyncpa [#allocation4 + $0x1], 0 }
   0x3   :  { %14 = vsyncpa [#allocation7], 0 }
   0x4   :  { %16 = vsyncpa [#allocation7 + $0x1], 0  ;;  %s1744_s15 = smov 0   ;;  %s1746_s16 = smov 0  }
   0x5   :  { %s1748_s17 = smov 0   ;;  %s1750_s18 = smov 0  }
   0x6 LB: > { %s1765_s19 = sadd.s32 4294967295, %s1713_s18   ;;  %s1307_s20 = sadd.s32 4294967294, %s1713_s18   ;;  %s1713_s18 = sphi %s1750_s18, %s2513_s18   ;;  %s1709_s17 = sphi %s1748_s17, %s2512_s17   ;;  %s1705_s16 = sphi %s1746_s16, %s2511_s16   ;;  %s1701_s15 = sphi %s1744_s15, %s2510_s15  }
   0x7   : > { %s1769_s21 = sadd.s32 1, %s1713_s18   ;;  %s102_s22 = sadd.s32 1, %s1709_s17 }
   0x8   : > { %s99_s23 = ssub.s32 %s1713_s18, %s1769_s21  ;;  %p112_p0 = scmp.ne.s32.totalorder %s1709_s17, %s1705_s16 }
   0x9   : > { %p100_p1 = scmp.eq.s32.totalorder %s99_s23, 0  ;;  %p113_p2 = scmp.eq.s32.totalorder %s1765_s19, 15 }
   0xa   : > { %p118_p3 = scmp.ne.s32.totalorder %s1705_s16, %s1701_s15  ;;  %p119_p4 = scmp.eq.s32.totalorder %s1307_s20, 15 }
   0xb   : > { %s1780_s24 = scalar_select %p100_p1, %s1709_s17, %s102_s22  }
   0xc   : > { %p1782_p5 = por %p113_p2, %p112_p0  ;;  %p1786_p6 = por %p119_p4, %p118_p3 }
   0xd   : > { %p1308_p7 = scmp.ge.s32.totalorder %s1713_s18, 1  ;;  %p152_p8 = scmp.lt.s32.totalorder %s1713_s18, 17 }
   0xe   : > { %p1546_p9 = scmp.eq.s32.totalorder %s1765_s19, 0  ;;  %s163_s29 = sshll.u32 %s2504_s1, 4  ;;  %s164_s29 = int_to_ptr.hbm [resolvable:$true] %s163_s29 }
   0xf   : > { %p153_p10 = pnand %p1308_p7, %p152_p8  ;;  %s1715_s30 = smov [#allocation2]  }
  0x10   : > { %s165_s5 = sshll.u32 %s1715_s30, 4  ;;  %s1716_s6 = smov 64   ;;  %s166_s5 = int_to_ptr.vmem [resolvable:$true] %s165_s5 }
  0x11   : > { %p1535_p11 = pneg %p153_p10  ;;  %s1717_s7 = smov 4  }
  0x12   : > { %190 = sbr.rel (%p153_p10) target bundleno = 409 (0x199), region = 28 }
  0x13   : > { %p1536_p12 = pnand %p1546_p9, %p1535_p11 }
  0x15   : > { %1538 = dma.hbm_to_vmem [thread:$0]  (!%p1536_p12), %s164_s29, 256, %s166_s5, [#allocation3], %s1716_s6, %s1716_s6, %s1717_s7  }
  0x17   : > { %1688 = dma.done.wait (%p1546_p9), [#allocation3], 256  }
  0x18   : > { %1690 = vsyncadd (%p1546_p9), [#allocation3], 4294967040  ;;  %s1313_s8 = sshll.u32 %s1765_s19, 6  ;;  %vm574_vm0 = vcmask 1044480   ;;  %vm575_vm1 = vcmask 1045504   ;;  %v1718_v0 = vmov 65535   ;;  %s1170_s29 = scalar_lea.hbm %s2506_s3, %s1765_s19 }
  0x19   : > { %p226_p13 = scmp.lt.s32.totalorder %s1313_s8, 1023  ;;  %v576_v1 = vsel %vm574_vm0, 4294967295, %v1718_v0  ;;  %v1451_v2 = vld [vmem:[#allocation2 + $0x8] sm:$0xf]  ;;  %v1520_v3 = vld [vmem:[#allocation2 + $0x8] sm:$0x30]  ;;  %s1183_s6 = scalar_lea.hbm %s2507_s4, %s1765_s19 }
  0x1a   : > { %v577_v4 = vsel %vm575_vm1, %v576_v1, 0  ;;  %v1452_v5 = vor.u32 %v1520_v3, %v1451_v2  ;;  %v1519_v7 = vld [vmem:[#allocation2] sm:$0xff]  ;;  %vm477_vm2 = vcmask 220160   ;;  %vm750_vm3 = vcmask 261120   ;;  %s2432_s23 = sand.u32 1, %s1705_s16   ;;  %s1635_s27 = scalar_lea.hbm %s2506_s3, 16 }
  0x1b   : > { %s2515_s8 = smov (!%p226_p13, %s1313_s8), 1023  ;;  %s218_s7 = scalar_lea.vmem [#allocation5], %s2432_s23  ;;  %vm948_vm4 = vcmask 253952  }
  0x1c   : > { %s1314_s9 = sshll.u32 %s2515_s8, 2  ;;  %v579_v6 = vand.u32 %v1452_v5, %v577_v4  ;;  %s1316_s13 = sshll.u32 %s2515_s8, 3 }
  0x1d   : > { %s1809_s12 = scalar_lea.vmem %s2503_s0, %s1314_s9  ;;  %s1871_s22 = scalar_lea.vmem %s2505_s2, %s1316_s13 }
  0x1e   : > { %587 = vmatpush.bf16.msra.mxu0 %v579_v6  ;;  %1521 = vmatpush.bf16.msra.mxu1 %v579_v6  ;;  %v1487_v8 = vld [vmem:[%s1809_s12] sm:$0xff]  ;;  %v1488_v10 = vld [vmem:[%s1809_s12 + $0x8] sm:$0xff]  ;;  %v1489_v13 = vld [vmem:[%s1809_s12 + $0x10] sm:$0xff]  ;;  %s2443_s8 = sshll.u32 %s218_s7, 4  ;;  %s2445_s9 = sshll.u32 %s1170_s29, 4  ;;  %s1173_s8 = int_to_ptr.vmem [resolvable:$true] %s2443_s8  ;;  %s1175_s9 = int_to_ptr.hbm [resolvable:$true] %s2445_s9 }
  0x1f   : > { %1522 = vmatpush.bf16.msra.mxu2 %v579_v6  ;;  %1523 = vmatpush.bf16.msra.mxu3 %v579_v6  ;;  %v1495_v9 = vld [vmem:[%s1809_s12 + $0x40] sm:$0xff]  ;;  %v1496_v11 = vld [vmem:[%s1809_s12 + $0x48] sm:$0xff]  ;;  %v1497_v14 = vld [vmem:[%s1809_s12 + $0x50] sm:$0xff]  ;;  %s224_s10 = scalar_lea.vmem [#allocation6], %s2432_s23  ;;  %s1154_s19 = scalar_lea.sflag [#allocation4], %s2432_s23 }
  0x20   : > { %v1503_v12 = vld [vmem:[%s1809_s12 + $0x80] sm:$0xff]  ;;  %v1504_v15 = vld [vmem:[%s1809_s12 + $0x88] sm:$0xff]  ;;  %v1490_v16 = vld [vmem:[%s1809_s12 + $0x18] sm:$0xff]  ;;  %s2448_s11 = sshll.u32 %s224_s10, 4  ;;  %s1629_s13 = sshra.s32 %s1175_s9, 4  ;;  %s1186_s11 = int_to_ptr.vmem [resolvable:$true] %s2448_s11  ;;  %s1630_s13 = int_to_ptr.hbm [resolvable:$true] %s1629_s13 }
  0x21   : > { %v1498_v17 = vld [vmem:[%s1809_s12 + $0x58] sm:$0xff]  ;;  %v1505_v18 = vld [vmem:[%s1809_s12 + $0x90] sm:$0xff]  ;;  %v1511_v19 = vld [vmem:[%s1809_s12 + $0xc0] sm:$0xff]  ;;  %s1631_s14 = scalar_lea.hbm %s1630_s13, 1  ;;  %p1636_p3 = scmp.lt.s32.totalorder %s1630_s13, %s2506_s3 }
  0x22   : > { %588 = vmatpush.bf16.msra.mxu0 %v1519_v7  ;;  %1524 = vmatpush.bf16.msra.mxu1 %v1519_v7  ;;  %v1491_v20 = vld [vmem:[%s1809_s12 + $0x20] sm:$0xff]  ;;  %v1506_v22 = vld [vmem:[%s1809_s12 + $0x98] sm:$0xff]  ;;  %v1512_v23 = vld [vmem:[%s1809_s12 + $0xc8] sm:$0xff]  ;;  %p1632_p0 = scmp.ne.s32.totalorder %s1630_s13, %s1631_s14  ;;  %p1637_p4 = scmp.lt.s32.totalorder %s1635_s27, %s1631_s14 }
  0x23   : > { %1525 = vmatpush.bf16.msra.mxu2 %v1519_v7  ;;  %1526 = vmatpush.bf16.msra.mxu3 %v1519_v7  ;;  %v1499_v21 = vld [vmem:[%s1809_s12 + $0x60] sm:$0xff]  ;;  %v1492_v24 = vld [vmem:[%s1809_s12 + $0x28] sm:$0xff]  ;;  %v1513_v27 = vld [vmem:[%s1809_s12 + $0xd0] sm:$0xff] }
  0x24   : > { %v1500_v25 = vld [vmem:[%s1809_s12 + $0x68] sm:$0xff]  ;;  %v1507_v26 = vld [vmem:[%s1809_s12 + $0xa0] sm:$0xff]  ;;  %v1493_v28 = vld [vmem:[%s1809_s12 + $0x30] sm:$0xff]  ;;  %p1633_p1 = pnand %p1632_p0, %p1782_p5  ;;  %p1638_p7 = por %p1637_p4, %p1636_p3 }
  0x25   : > { %1453 = vmatmul.msk.bf16.vlgmr.msra.gmra.mxu0 %vm477_vm2, %v1487_v8  ;;  %1461 = vmatmul.msk.bf16.vlgmr.msra.gmra.mxu1 %vm477_vm2, %v1495_v9  ;;  %v1501_v29 = vld [vmem:[%s1809_s12 + $0x70] sm:$0xff]  ;;  %v1508_v30 = vld [vmem:[%s1809_s12 + $0xa8] sm:$0xff]  ;;  %v1514_v31 = vld [vmem:[%s1809_s12 + $0xd8] sm:$0xff] }
  0x26   : > { %1469 = vmatmul.msk.bf16.vlgmr.msra.gmra.mxu2 %vm477_vm2, %v1503_v12  ;;  %1477 = vmatmul.msk.bf16.vlgmr.msra.gmra.mxu3 %vm477_vm2, %v1511_v19  ;;  %v1494_v32 = vld [vmem:[%s1809_s12 + $0x38] sm:$0xff]  ;;  %v1509_v34 = vld [vmem:[%s1809_s12 + $0xb0] sm:$0xff]  ;;  %v1515_v35 = vld [vmem:[%s1809_s12 + $0xe0] sm:$0xff]  ;;  %p1634_p2 = pneg %p1633_p1 }
  0x27   : > { %v1502_v33 = vld [vmem:[%s1809_s12 + $0x78] sm:$0xff]  ;;  %v1516_v39 = vld [vmem:[%s1809_s12 + $0xe8] sm:$0xff]  ;;  %v1517_v56 = vld [vmem:[%s1809_s12 + $0xf0] sm:$0xff] }
  0x28   : > { %v1510_v38 = vld [vmem:[%s1809_s12 + $0xb8] sm:$0xff]  ;;  %p1639_p8 = pnand %p1638_p7, %p1634_p2 }
  0x29   : > { %v1518_v9 = vld [vmem:[%s1809_s12 + $0xf8] sm:$0xff]  ;;  %s2450_s12 = sshll.u32 %s1183_s6, 4  ;;  %s1188_s12 = int_to_ptr.hbm [resolvable:$true] %s2450_s12 }
  0x35   : > { %1454 = vmatmul.msk.bf16.gmra.mxu0 %vm477_vm2, %v1488_v10  ;;  %1462 = vmatmul.msk.bf16.gmra.mxu1 %vm477_vm2, %v1496_v11 }
  0x36   : > { %1470 = vmatmul.msk.bf16.gmra.mxu2 %vm477_vm2, %v1504_v15  ;;  %1478 = vmatmul.msk.bf16.gmra.mxu3 %vm477_vm2, %v1512_v23 }
  0x45   : > { %1455 = vmatmul.msk.bf16.gmra.mxu0 %vm477_vm2, %v1489_v13  ;;  %1463 = vmatmul.msk.bf16.gmra.mxu1 %vm477_vm2, %v1497_v14 }
  0x46   : > { %1471 = vmatmul.msk.bf16.gmra.mxu2 %vm477_vm2, %v1505_v18  ;;  %1479 = vmatmul.msk.bf16.gmra.mxu3 %vm477_vm2, %v1513_v27 }
  0x55   : > { %1456 = vmatmul.msk.bf16.gmra.mxu0 %vm477_vm2, %v1490_v16  ;;  %1464 = vmatmul.msk.bf16.gmra.mxu1 %vm477_vm2, %v1498_v17 }
  0x56   : > { %1472 = vmatmul.msk.bf16.gmra.mxu2 %vm477_vm2, %v1506_v22  ;;  %1480 = vmatmul.msk.bf16.gmra.mxu3 %vm477_vm2, %v1514_v31 }
  0x65   : > { %1457 = vmatmul.msk.bf16.gmra.mxu0 %vm477_vm2, %v1491_v20  ;;  %1465 = vmatmul.msk.bf16.gmra.mxu1 %vm477_vm2, %v1499_v21 }
  0x66   : > { %1473 = vmatmul.msk.bf16.gmra.mxu2 %vm477_vm2, %v1507_v26  ;;  %1481 = vmatmul.msk.bf16.gmra.mxu3 %vm477_vm2, %v1515_v35 }
  0x75   : > { %1458 = vmatmul.msk.bf16.gmra.mxu0 %vm477_vm2, %v1492_v24  ;;  %1466 = vmatmul.msk.bf16.gmra.mxu1 %vm477_vm2, %v1500_v25 }
  0x76   : > { %1474 = vmatmul.msk.bf16.gmra.mxu2 %vm477_vm2, %v1508_v30  ;;  %1482 = vmatmul.msk.bf16.gmra.mxu3 %vm477_vm2, %v1516_v39 }
  0x85   : > { %1459 = vmatmul.msk.bf16.gmra.mxu0 %vm477_vm2, %v1493_v28  ;;  %1467 = vmatmul.msk.bf16.gmra.mxu1 %vm477_vm2, %v1501_v29 }
  0x86   : > { %1475 = vmatmul.msk.bf16.gmra.mxu2 %vm477_vm2, %v1509_v34  ;;  %1483 = vmatmul.msk.bf16.gmra.mxu3 %vm477_vm2, %v1517_v56 }
  0x95   : > { %1460 = vmatmul.msk.bf16.gmra.mxu0 %vm477_vm2, %v1494_v32  ;;  %1468 = vmatmul.msk.bf16.gmra.mxu1 %vm477_vm2, %v1502_v33 }
  0x96   : > { %1476 = vmatmul.msk.bf16.gmra.mxu2 %vm477_vm2, %v1510_v38  ;;  %1484 = vmatmul.msk.bf16.gmra.mxu3 %vm477_vm2, %v1518_v9 }
  0xa2   : > { %v590_v36 = vpop.f32.mrf.mxu0  ;;  %v1873_v37 = vpop.f32.mrf.mxu1 }
  0xa3   : > { %751 = vst.msk [vmem:[%s1871_s22] sm:$0xff] %vm750_vm3, %v590_v36  ;;  %v950_v40 = vmul.f32 %v590_v36, %v590_v36  ;;  %v815_v43 = vsel %vm750_vm3, %v590_v36, 0.0 }
  0xa4   : > { %767 = vst.msk [vmem:[%s1871_s22 + $0x80] sm:$0xff] %vm750_vm3, %v1873_v37 }
  0xa5   : > { %v1014_v47 = vsel %vm750_vm3, %v950_v40, 0.0 }
  0xa9   : > { %v1911_v62 = vpop.f32.mrf.mxu2  ;;  %v1970_v20 = vpop.f32.mrf.mxu3 }
  0xaa   : > { %v592_v41 = vpop.f32.mrf.mxu0  ;;  %v1884_v42 = vpop.f32.mrf.mxu1  ;;  %783 = vst.msk [vmem:[%s1871_s22 + $0x100] sm:$0xff] %vm750_vm3, %v1911_v62 }
  0xab   : > { %752 = vst.msk [vmem:[%s1871_s22 + $0x8] sm:$0xff] %vm750_vm3, %v592_v41  ;;  %v816_v44 = vsel %vm750_vm3, %v592_v41, 0.0  ;;  %v951_v45 = vmul.f32 %v592_v41, %v592_v41 }
  0xac   : > { %v817_v46 = vadd.f32 %v816_v44, %v815_v43  ;;  %768 = vst.msk [vmem:[%s1871_s22 + $0x88] sm:$0xff] %vm750_vm3, %v1884_v42 }
  0xad   : > { %v1015_v48 = vsel %vm750_vm3, %v951_v45, 0.0  ;;  %799 = vst.msk [vmem:[%s1871_s22 + $0x180] sm:$0xff] %vm750_vm3, %v1970_v20 }
  0xae   : > { %v1016_v49 = vadd.f32 %v1015_v48, %v1014_v47 }
  0xb1   : > { %v1925_v6 = vpop.f32.mrf.mxu2  ;;  %v1987_v24 = vpop.f32.mrf.mxu3 }
  0xb2   : > { %v595_v50 = vpop.f32.mrf.mxu0  ;;  %v1895_v51 = vpop.f32.mrf.mxu1  ;;  %784 = vst.msk [vmem:[%s1871_s22 + $0x108] sm:$0xff] %vm750_vm3, %v1925_v6 }
  0xb3   : > { %753 = vst.msk [vmem:[%s1871_s22 + $0x10] sm:$0xff] %vm750_vm3, %v595_v50  ;;  %v818_v52 = vsel %vm750_vm3, %v595_v50, 0.0  ;;  %v952_v53 = vmul.f32 %v595_v50, %v595_v50 }
  0xb4   : > { %v819_v54 = vadd.f32 %v818_v52, %v817_v46  ;;  %769 = vst.msk [vmem:[%s1871_s22 + $0x90] sm:$0xff] %vm750_vm3, %v1895_v51 }
  0xb5   : > { %v1017_v55 = vsel %vm750_vm3, %v952_v53, 0.0  ;;  %800 = vst.msk [vmem:[%s1871_s22 + $0x188] sm:$0xff] %vm750_vm3, %v1987_v24 }
  0xb6   : > { %v1018_v57 = vadd.f32 %v1017_v55, %v1016_v49 }
  0xb9   : > { %v1944_v13 = vpop.f32.mrf.mxu2  ;;  %v2004_v28 = vpop.f32.mrf.mxu3 }
  0xba   : > { %v597_v58 = vpop.f32.mrf.mxu0  ;;  %v1906_v59 = vpop.f32.mrf.mxu1  ;;  %785 = vst.msk [vmem:[%s1871_s22 + $0x110] sm:$0xff] %vm750_vm3, %v1944_v13 }
  0xbb   : > { %754 = vst.msk [vmem:[%s1871_s22 + $0x18] sm:$0xff] %vm750_vm3, %v597_v58  ;;  %v820_v60 = vsel %vm750_vm3, %v597_v58, 0.0  ;;  %v953_v61 = vmul.f32 %v597_v58, %v597_v58 }
  0xbc   : > { %v821_v63 = vadd.f32 %v820_v60, %v819_v54  ;;  %770 = vst.msk [vmem:[%s1871_s22 + $0x98] sm:$0xff] %vm750_vm3, %v1906_v59 }
  0xbd   : > { %v1019_v0 = vsel %vm750_vm3, %v953_v61, 0.0  ;;  %801 = vst.msk [vmem:[%s1871_s22 + $0x190] sm:$0xff] %vm750_vm3, %v2004_v28 }
  0xbe   : > { %v1020_v1 = vadd.f32 %v1019_v0, %v1018_v57 }
  0xc1   : > { %v1956_v16 = vpop.f32.mrf.mxu2  ;;  %v2021_v32 = vpop.f32.mrf.mxu3 }
  0xc2   : > { %v600_v2 = vpop.f32.mrf.mxu0  ;;  %v1920_v3 = vpop.f32.mrf.mxu1  ;;  %786 = vst.msk [vmem:[%s1871_s22 + $0x118] sm:$0xff] %vm750_vm3, %v1956_v16 }
  0xc3   : > { %755 = vst.msk [vmem:[%s1871_s22 + $0x20] sm:$0xff] %vm750_vm3, %v600_v2  ;;  %v822_v4 = vsel %vm750_vm3, %v600_v2, 0.0  ;;  %v954_v5 = vmul.f32 %v600_v2, %v600_v2 }
  0xc4   : > { %v1927_v7 = vadd.f32 %v822_v4, %v821_v63  ;;  %771 = vst.msk [vmem:[%s1871_s22 + $0xa0] sm:$0xff] %vm750_vm3, %v1920_v3 }
  0xc5   : > { %v1021_v8 = vsel %vm750_vm3, %v954_v5, 0.0  ;;  %802 = vst.msk [vmem:[%s1871_s22 + $0x198] sm:$0xff] %vm750_vm3, %v2021_v32 }
  0xc6   : > { %v1937_v10 = vadd.f32 %v1021_v8, %v1020_v1 }
  0xc9   : > { %v1968_v19 = vpop.f32.mrf.mxu2  ;;  %v2038_v36 = vpop.f32.mrf.mxu3 }
  0xca   : > { %v602_v11 = vpop.f32.mrf.mxu0  ;;  %v1940_v12 = vpop.f32.mrf.mxu1  ;;  %787 = vst.msk [vmem:[%s1871_s22 + $0x120] sm:$0xff] %vm750_vm3, %v1968_v19 }
  0xcb   : > { %756 = vst.msk [vmem:[%s1871_s22 + $0x28] sm:$0xff] %vm750_vm3, %v602_v11  ;;  %v955_v40 = vmul.f32 %v602_v11, %v602_v11  ;;  %v824_v44 = vsel %vm750_vm3, %v602_v11, 0.0 }
  0xcc   : > { %772 = vst.msk [vmem:[%s1871_s22 + $0xa8] sm:$0xff] %vm750_vm3, %v1940_v12  ;;  %v825_v49 = vadd.f32 %v824_v44, %v1927_v7 }
  0xcd   : > { %803 = vst.msk [vmem:[%s1871_s22 + $0x1a0] sm:$0xff] %vm750_vm3, %v2038_v36  ;;  %v1023_v46 = vsel %vm750_vm3, %v955_v40, 0.0 }
  0xce   : > { %v1024_v54 = vadd.f32 %v1023_v46, %v1937_v10 }
  0xd1   : > { %v1985_v23 = vpop.f32.mrf.mxu2  ;;  %v2055_v43 = vpop.f32.mrf.mxu3 }
  0xd2   : > { %v605_v14 = vpop.f32.mrf.mxu0  ;;  %v1952_v15 = vpop.f32.mrf.mxu1  ;;  %788 = vst.msk [vmem:[%s1871_s22 + $0x128] sm:$0xff] %vm750_vm3, %v1985_v23 }
  0xd3   : > { %757 = vst.msk [vmem:[%s1871_s22 + $0x30] sm:$0xff] %vm750_vm3, %v605_v14  ;;  %v956_v45 = vmul.f32 %v605_v14, %v605_v14  ;;  %v826_v47 = vsel %vm750_vm3, %v605_v14, 0.0 }
  0xd4   : > { %773 = vst.msk [vmem:[%s1871_s22 + $0xb0] sm:$0xff] %vm750_vm3, %v1952_v15  ;;  %v827_v55 = vadd.f32 %v826_v47, %v825_v49 }
  0xd5   : > { %804 = vst.msk [vmem:[%s1871_s22 + $0x1a8] sm:$0xff] %vm750_vm3, %v2055_v43  ;;  %v1025_v50 = vsel %vm750_vm3, %v956_v45, 0.0 }
  0xd6   : > { %v1026_v1 = vadd.f32 %v1025_v50, %v1024_v54 }
  0xd9   : > { %v2002_v27 = vpop.f32.mrf.mxu2  ;;  %v2081_v0 = vpop.f32.mrf.mxu3 }
  0xda   : > { %v607_v17 = vpop.f32.mrf.mxu0  ;;  %v1964_v18 = vpop.f32.mrf.mxu1  ;;  %789 = vst.msk [vmem:[%s1871_s22 + $0x130] sm:$0xff] %vm750_vm3, %v2002_v27 }
  0xdb   : > { %758 = vst.msk [vmem:[%s1871_s22 + $0x38] sm:$0xff] %vm750_vm3, %v607_v17  ;;  %v957_v48 = vmul.f32 %v607_v17, %v607_v17  ;;  %v828_v52 = vsel %vm750_vm3, %v607_v17, 0.0 }
  0xdc   : > { %774 = vst.msk [vmem:[%s1871_s22 + $0xb8] sm:$0xff] %vm750_vm3, %v1964_v18  ;;  %v829_v2 = vadd.f32 %v828_v52, %v827_v55 }
  0xdd   : > { %v1027_v58 = vsel %vm750_vm3, %v957_v48, 0.0  ;;  %805 = vst.msk [vmem:[%s1871_s22 + $0x1b0] sm:$0xff] %vm750_vm3, %v2081_v0 }
  0xde   : > { %v1028_v8 = vadd.f32 %v1027_v58, %v1026_v1 }
  0xe1   : > { %v2019_v31 = vpop.f32.mrf.mxu2 }
  0xe2   : > { %v610_v21 = vpop.f32.mrf.mxu0  ;;  %v1981_v22 = vpop.f32.mrf.mxu1  ;;  %790 = vst.msk [vmem:[%s1871_s22 + $0x138] sm:$0xff] %vm750_vm3, %v2019_v31 }
  0xe3   : > { %759 = vst.msk [vmem:[%s1871_s22 + $0x40] sm:$0xff] %vm750_vm3, %v610_v21  ;;  %v958_v53 = vmul.f32 %v610_v21, %v610_v21  ;;  %v830_v60 = vsel %vm750_vm3, %v610_v21, 0.0 }
  0xe4   : > { %775 = vst.msk [vmem:[%s1871_s22 + $0xc0] sm:$0xff] %vm750_vm3, %v1981_v22  ;;  %v831_v9 = vadd.f32 %v830_v60, %v829_v2 }
  0xe5   : > { %v1029_v4 = vsel %vm750_vm3, %v958_v53, 0.0  ;;  %v2106_v53 = vpop.f32.mrf.mxu3 }
  0xe6   : > { %v1030_v17 = vadd.f32 %v1029_v4, %v1028_v8  ;;  %806 = vst.msk [vmem:[%s1871_s22 + $0x1b8] sm:$0xff] %vm750_vm3, %v2106_v53 }
  0xe9   : > { %v2036_v35 = vpop.f32.mrf.mxu2 }
  0xea   : > { %v612_v25 = vpop.f32.mrf.mxu0  ;;  %v1998_v26 = vpop.f32.mrf.mxu1  ;;  %791 = vst.msk [vmem:[%s1871_s22 + $0x140] sm:$0xff] %vm750_vm3, %v2036_v35 }
  0xeb   : > { %760 = vst.msk [vmem:[%s1871_s22 + $0x48] sm:$0xff] %vm750_vm3, %v612_v25  ;;  %v959_v61 = vmul.f32 %v612_v25, %v612_v25  ;;  %v832_v5 = vsel %vm750_vm3, %v612_v25, 0.0 }
  0xec   : > { %776 = vst.msk [vmem:[%s1871_s22 + $0xc8] sm:$0xff] %vm750_vm3, %v1998_v26  ;;  %v833_v21 = vadd.f32 %v832_v5, %v831_v9 }
  0xed   : > { %v1031_v10 = vsel %vm750_vm3, %v959_v61, 0.0 }
  0xee   : > { %v1032_v45 = vadd.f32 %v1031_v10, %v1030_v17 }
  0xf1   : > { %v2053_v41 = vpop.f32.mrf.mxu2 }
  0xf2   : > { %v615_v29 = vpop.f32.mrf.mxu0  ;;  %v2015_v30 = vpop.f32.mrf.mxu1  ;;  %792 = vst.msk [vmem:[%s1871_s22 + $0x148] sm:$0xff] %vm750_vm3, %v2053_v41 }
  0xf3   : > { %761 = vst.msk [vmem:[%s1871_s22 + $0x50] sm:$0xff] %vm750_vm3, %v615_v29  ;;  %v960_v7 = vmul.f32 %v615_v29, %v615_v29  ;;  %v834_v11 = vsel %vm750_vm3, %v615_v29, 0.0 }
  0xf4   : > { %777 = vst.msk [vmem:[%s1871_s22 + $0xd0] sm:$0xff] %vm750_vm3, %v2015_v30  ;;  %v835_v46 = vadd.f32 %v834_v11, %v833_v21  ;;  %v966_v11 = vmul.f32 %v1873_v37, %v1873_v37 }
  0xf5   : > { %v1033_v25 = vsel %vm750_vm3, %v960_v7, 0.0 }
  0xf9   : > { %v2079_v63 = vpop.f32.mrf.mxu2 }
  0xfa   : > { %v617_v33 = vpop.f32.mrf.mxu0  ;;  %v2032_v34 = vpop.f32.mrf.mxu1  ;;  %793 = vst.msk [vmem:[%s1871_s22 + $0x150] sm:$0xff] %vm750_vm3, %v2079_v63 }
  0xfb   : > { %762 = vst.msk [vmem:[%s1871_s22 + $0x58] sm:$0xff] %vm750_vm3, %v617_v33  ;;  %v961_v14 = vmul.f32 %v617_v33, %v617_v33  ;;  %v836_v40 = vsel %vm750_vm3, %v617_v33, 0.0  ;;  %v1034_v33 = vadd.f32 %v1033_v25, %v1032_v45  ;;  %v2131_v25 = vpop.f32.mrf.mxu3  ;;  %v846_v45 = vsel %vm750_vm3, %v1873_v37, 0.0 }
  0xfc   : > { %778 = vst.msk [vmem:[%s1871_s22 + $0xd8] sm:$0xff] %vm750_vm3, %v2032_v34  ;;  %v837_v54 = vadd.f32 %v836_v40, %v835_v46  ;;  %v967_v46 = vmul.f32 %v1884_v42, %v1884_v42  ;;  %v968_v37 = vmul.f32 %v1895_v51, %v1895_v51 }
  0xfd   : > { %v1035_v49 = vsel %vm750_vm3, %v961_v14, 0.0  ;;  %807 = vst.msk [vmem:[%s1871_s22 + $0x1c0] sm:$0xff] %vm750_vm3, %v2131_v25 }
 0x101   : > { %v2104_v52 = vpop.f32.mrf.mxu2 }
 0x102   : > { %v620_v38 = vpop.f32.mrf.mxu0  ;;  %v2049_v39 = vpop.f32.mrf.mxu1  ;;  %794 = vst.msk [vmem:[%s1871_s22 + $0x158] sm:$0xff] %vm750_vm3, %v2104_v52 }
 0x103   : > { %763 = vst.msk [vmem:[%s1871_s22 + $0x60] sm:$0xff] %vm750_vm3, %v620_v38  ;;  %v962_v44 = vmul.f32 %v620_v38, %v620_v38  ;;  %v838_v29 = vsel %vm750_vm3, %v620_v38, 0.0  ;;  %v1036_v38 = vadd.f32 %v1035_v49, %v1034_v33  ;;  %v848_v33 = vsel %vm750_vm3, %v1884_v42, 0.0 }
 0x104   : > { %779 = vst.msk [vmem:[%s1871_s22 + $0xe0] sm:$0xff] %vm750_vm3, %v2049_v39  ;;  %v839_v61 = vadd.f32 %v838_v29, %v837_v54  ;;  %v852_v42 = vsel %vm750_vm3, %v1906_v59, 0.0 }
 0x105   : > { %v1037_v55 = vsel %vm750_vm3, %v962_v44, 0.0 }
 0x106   : > { %v1038_v4 = vadd.f32 %v1037_v55, %v1036_v38  ;;  %v969_v38 = vmul.f32 %v1906_v59, %v1906_v59  ;;  %v971_v59 = vmul.f32 %v1940_v12, %v1940_v12 }
 0x109   : > { %v2129_v21 = vpop.f32.mrf.mxu2 }
 0x10a   : > { %v622_v56 = vpop.f32.mrf.mxu0  ;;  %v2073_v57 = vpop.f32.mrf.mxu1  ;;  %795 = vst.msk [vmem:[%s1871_s22 + $0x160] sm:$0xff] %vm750_vm3, %v2129_v21 }
 0x10b   : > { %764 = vst.msk [vmem:[%s1871_s22 + $0x68] sm:$0xff] %vm750_vm3, %v622_v56  ;;  %v963_v50 = vmul.f32 %v622_v56, %v622_v56  ;;  %v840_v58 = vsel %vm750_vm3, %v622_v56, 0.0 }
 0x10c   : > { %780 = vst.msk [vmem:[%s1871_s22 + $0xe8] sm:$0xff] %vm750_vm3, %v2073_v57  ;;  %v841_v5 = vadd.f32 %v840_v58, %v839_v61  ;;  %v1047_v58 = vsel %vm750_vm3, %v967_v46, 0.0 }
 0x10d   : > { %v1039_v1 = vsel %vm750_vm3, %v963_v50, 0.0  ;;  %v1045_v50 = vsel %vm750_vm3, %v966_v11, 0.0 }
 0x10e   : > { %v1040_v56 = vadd.f32 %v1039_v1, %v1038_v4  ;;  %v970_v4 = vmul.f32 %v1920_v3, %v1920_v3 }
 0x112   : > { %v625_v47 = vpop.f32.mrf.mxu0  ;;  %v2098_v48 = vpop.f32.mrf.mxu1 }
 0x113   : > { %765 = vst.msk [vmem:[%s1871_s22 + $0x70] sm:$0xff] %vm750_vm3, %v625_v47  ;;  %v964_v60 = vmul.f32 %v625_v47, %v625_v47  ;;  %v842_v2 = vsel %vm750_vm3, %v625_v47, 0.0 }
 0x114   : > { %781 = vst.msk [vmem:[%s1871_s22 + $0xf0] sm:$0xff] %vm750_vm3, %v2098_v48  ;;  %v843_v8 = vadd.f32 %v842_v2, %v841_v5  ;;  %v1049_v2 = vsel %vm750_vm3, %v968_v37, 0.0  ;;  %v2162_v5 = vpop.f32.mrf.mxu2  ;;  %v974_v37 = vmul.f32 %v1981_v22, %v1981_v22 }
 0x115   : > { %v1041_v7 = vsel %vm750_vm3, %v964_v60, 0.0  ;;  %v850_v60 = vsel %vm750_vm3, %v1895_v51, 0.0  ;;  %796 = vst.msk [vmem:[%s1871_s22 + $0x168] sm:$0xff] %vm750_vm3, %v2162_v5  ;;  %v1051_v51 = vsel %vm750_vm3, %v969_v38, 0.0  ;;  %v862_v38 = vsel %vm750_vm3, %v1981_v22, 0.0 }
 0x116   : > { %v1042_v40 = vadd.f32 %v1041_v7, %v1040_v56  ;;  %v2164_v7 = vpop.f32.mrf.mxu3 }
 0x117   : > { %808 = vst.msk [vmem:[%s1871_s22 + $0x1c8] sm:$0xff] %vm750_vm3, %v2164_v7 }
 0x11a   : > { %v627_v9 = vpop.f32.mrf.mxu0  ;;  %v2122_v10 = vpop.f32.mrf.mxu1 }
 0x11b   : > { %766 = vst.msk [vmem:[%s1871_s22 + $0x78] sm:$0xff] %vm750_vm3, %v627_v9  ;;  %v844_v14 = vsel %vm750_vm3, %v627_v9, 0.0  ;;  %v965_v17 = vmul.f32 %v627_v9, %v627_v9  ;;  %v854_v9 = vsel %vm750_vm3, %v1920_v3, 0.0  ;;  %v1055_v3 = vsel %vm750_vm3, %v971_v59, 0.0 }
 0x11c   : > { %v845_v44 = vadd.f32 %v844_v14, %v843_v8  ;;  %782 = vst.msk [vmem:[%s1871_s22 + $0xf8] sm:$0xff] %vm750_vm3, %v2122_v10 }
 0x11d   : > { %v1043_v47 = vsel %vm750_vm3, %v965_v17, 0.0  ;;  %v1053_v17 = vsel %vm750_vm3, %v970_v4, 0.0  ;;  %v976_v4 = vmul.f32 %v2015_v30, %v2015_v30 }
 0x11e   : > { %v847_v49 = vadd.f32 %v846_v45, %v845_v44  ;;  %v1044_v29 = vadd.f32 %v1043_v47, %v1042_v40  ;;  %v856_v40 = vsel %vm750_vm3, %v1940_v12, 0.0  ;;  %v972_v44 = vmul.f32 %v1952_v15, %v1952_v15 }
 0x11f   : > { %v858_v47 = vsel %vm750_vm3, %v1952_v15, 0.0  ;;  %v860_v12 = vsel %vm750_vm3, %v1964_v18, 0.0 }
 0x120   : > { %v849_v54 = vadd.f32 %v848_v33, %v847_v49  ;;  %v1046_v55 = vadd.f32 %v1045_v50, %v1044_v29  ;;  %v973_v49 = vmul.f32 %v1964_v18, %v1964_v18  ;;  %v1057_v33 = vsel %vm750_vm3, %v972_v44, 0.0 }
 0x121   : > { %v975_v18 = vmul.f32 %v1998_v26, %v1998_v26 }
 0x122   : > { %v851_v61 = vadd.f32 %v850_v60, %v849_v54  ;;  %v1048_v1 = vadd.f32 %v1047_v58, %v1046_v55  ;;  %v2192_v54 = vpop.f32.mrf.mxu2  ;;  %v2194_v55 = vpop.f32.mrf.mxu3  ;;  %v1059_v15 = vsel %vm750_vm3, %v973_v49, 0.0 }
 0x123   : > { %797 = vst.msk [vmem:[%s1871_s22 + $0x170] sm:$0xff] %vm750_vm3, %v2192_v54  ;;  %v1063_v22 = vsel %vm750_vm3, %v975_v18, 0.0  ;;  %v982_v18 = vmul.f32 %v1911_v62, %v1911_v62 }
 0x124   : > { %v853_v56 = vadd.f32 %v852_v42, %v851_v61  ;;  %v1050_v8 = vadd.f32 %v1049_v2, %v1048_v1  ;;  %809 = vst.msk [vmem:[%s1871_s22 + $0x1d0] sm:$0xff] %vm750_vm3, %v2194_v55  ;;  %v1061_v2 = vsel %vm750_vm3, %v974_v37, 0.0  ;;  %v864_v42 = vsel %vm750_vm3, %v1998_v26, 0.0 }
 0x125   : > { %v868_v26 = vsel %vm750_vm3, %v2032_v34, 0.0 }
 0x126   : > { %v855_v11 = vadd.f32 %v854_v9, %v853_v56  ;;  %v1052_v14 = vadd.f32 %v1051_v51, %v1050_v8  ;;  %v866_v51 = vsel %vm750_vm3, %v2015_v30, 0.0  ;;  %v977_v9 = vmul.f32 %v2032_v34, %v2032_v34 }
 0x127   : > { %v979_v34 = vmul.f32 %v2073_v57, %v2073_v57 }
 0x128   : > { %v857_v45 = vadd.f32 %v856_v40, %v855_v11  ;;  %v1054_v46 = vadd.f32 %v1053_v17, %v1052_v14  ;;  %v1065_v14 = vsel %vm750_vm3, %v976_v4, 0.0  ;;  %v978_v17 = vmul.f32 %v2049_v39, %v2049_v39 }
 0x129   : > { %v1067_v30 = vsel %vm750_vm3, %v977_v9, 0.0  ;;  %v983_v4 = vmul.f32 %v1925_v6, %v1925_v6  ;;  %v984_v9 = vmul.f32 %v1944_v13, %v1944_v13 }
 0x12a   : > { %v1056_v29 = vadd.f32 %v1055_v3, %v1054_v46  ;;  %v859_v50 = vadd.f32 %v858_v47, %v857_v45  ;;  %v2222_v40 = vpop.f32.mrf.mxu2  ;;  %v2224_v44 = vpop.f32.mrf.mxu3  ;;  %v870_v3 = vsel %vm750_vm3, %v2049_v39, 0.0  ;;  %v1071_v39 = vsel %vm750_vm3, %v979_v34, 0.0 }
 0x12b   : > { %798 = vst.msk [vmem:[%s1871_s22 + $0x178] sm:$0xff] %vm750_vm3, %v2222_v40 }
 0x12c   : > { %v861_v58 = vadd.f32 %v860_v12, %v859_v50  ;;  %v1058_v60 = vadd.f32 %v1057_v33, %v1056_v29  ;;  %810 = vst.msk [vmem:[%s1871_s22 + $0x1d8] sm:$0xff] %vm750_vm3, %v2224_v44  ;;  %v1069_v29 = vsel %vm750_vm3, %v978_v17, 0.0  ;;  %v872_v50 = vsel %vm750_vm3, %v2073_v57, 0.0 }
 0x12d   : > { %v980_v33 = vmul.f32 %v2098_v48, %v2098_v48 }
 0x12e   : > { %v863_v61 = vadd.f32 %v862_v38, %v861_v58  ;;  %v1060_v1 = vadd.f32 %v1059_v15, %v1058_v60  ;;  %v874_v58 = vsel %vm750_vm3, %v2098_v48, 0.0  ;;  %v981_v60 = vmul.f32 %v2122_v10, %v2122_v10 }
 0x12f   : > { %v1073_v57 = vsel %vm750_vm3, %v980_v33, 0.0  ;;  %v878_v48 = vsel %vm750_vm3, %v1911_v62, 0.0  ;;  %v1079_v62 = vsel %vm750_vm3, %v983_v4, 0.0  ;;  %v894_v4 = vsel %vm750_vm3, %v2036_v35, 0.0 }
 0x130   : > { %v865_v56 = vadd.f32 %v864_v42, %v863_v61  ;;  %v1062_v8 = vadd.f32 %v1061_v2, %v1060_v1  ;;  %v876_v61 = vsel %vm750_vm3, %v2122_v10, 0.0  ;;  %v880_v10 = vsel %vm750_vm3, %v1925_v6, 0.0 }
 0x131   : > { %v884_v6 = vsel %vm750_vm3, %v1956_v16, 0.0 }
 0x132   : > { %v867_v59 = vadd.f32 %v866_v51, %v865_v56  ;;  %v1064_v11 = vadd.f32 %v1063_v22, %v1062_v8  ;;  %v2252_v1 = vpop.f32.mrf.mxu3  ;;  %v1075_v56 = vsel %vm750_vm3, %v981_v60, 0.0  ;;  %v1077_v51 = vsel %vm750_vm3, %v982_v18, 0.0 }
 0x133   : > { %811 = vst.msk [vmem:[%s1871_s22 + $0x1e0] sm:$0xff] %vm750_vm3, %v2252_v1 }
 0x134   : > { %v869_v45 = vadd.f32 %v868_v26, %v867_v59  ;;  %v1066_v46 = vadd.f32 %v1065_v14, %v1064_v11  ;;  %v882_v14 = vsel %vm750_vm3, %v1944_v13, 0.0  ;;  %v985_v26 = vmul.f32 %v1956_v16, %v1956_v16 }
 0x136   : > { %v871_v47 = vadd.f32 %v870_v3, %v869_v45  ;;  %v1068_v49 = vadd.f32 %v1067_v30, %v1066_v46  ;;  %v1081_v46 = vsel %vm750_vm3, %v984_v9, 0.0  ;;  %v986_v30 = vmul.f32 %v1968_v19, %v1968_v19 }
 0x137   : > { %v1083_v13 = vsel %vm750_vm3, %v985_v26, 0.0 }
 0x138   : > { %v1070_v12 = vadd.f32 %v1069_v29, %v1068_v49  ;;  %v873_v37 = vadd.f32 %v872_v50, %v871_v47  ;;  %v886_v49 = vsel %vm750_vm3, %v1968_v19, 0.0  ;;  %v987_v29 = vmul.f32 %v1985_v23, %v1985_v23 }
 0x139   : > { %v1085_v33 = vsel %vm750_vm3, %v986_v30, 0.0  ;;  %v890_v19 = vsel %vm750_vm3, %v2002_v27, 0.0 }
 0x13a   : > { %v1072_v15 = vadd.f32 %v1071_v39, %v1070_v12  ;;  %v875_v38 = vadd.f32 %v874_v58, %v873_v37  ;;  %v2277_v3 = vpop.f32.mrf.mxu3  ;;  %v888_v12 = vsel %vm750_vm3, %v1985_v23, 0.0  ;;  %v988_v37 = vmul.f32 %v2002_v27, %v2002_v27 }
 0x13b   : > { %812 = vst.msk [vmem:[%s1871_s22 + $0x1e8] sm:$0xff] %vm750_vm3, %v2277_v3  ;;  %v1087_v60 = vsel %vm750_vm3, %v987_v29, 0.0  ;;  %v892_v23 = vsel %vm750_vm3, %v2019_v31, 0.0  ;;  %v904_v29 = vsel %vm750_vm3, %v2162_v5, 0.0 }
 0x13c   : > { %v1074_v2 = vadd.f32 %v1073_v57, %v1072_v15  ;;  %v877_v42 = vadd.f32 %v876_v61, %v875_v38  ;;  %v989_v15 = vmul.f32 %v2019_v31, %v2019_v31  ;;  %v1089_v57 = vsel %vm750_vm3, %v988_v37, 0.0 }
 0x13d   : > { %v990_v61 = vmul.f32 %v2036_v35, %v2036_v35  ;;  %v898_v35 = vsel %vm750_vm3, %v2079_v63, 0.0  ;;  %v997_v37 = vmul.f32 %v2222_v40, %v2222_v40 }
 0x13e   : > { %v879_v8 = vadd.f32 %v878_v48, %v877_v42  ;;  %v1076_v22 = vadd.f32 %v1075_v56, %v1074_v2  ;;  %v1091_v27 = vsel %vm750_vm3, %v989_v15, 0.0  ;;  %v991_v56 = vmul.f32 %v2053_v41, %v2053_v41 }
 0x140   : > { %v881_v59 = vadd.f32 %v880_v10, %v879_v8  ;;  %v1078_v11 = vadd.f32 %v1077_v51, %v1076_v22  ;;  %v1093_v22 = vsel %vm750_vm3, %v990_v61, 0.0  ;;  %v896_v51 = vsel %vm750_vm3, %v2053_v41, 0.0 }
 0x141   : > { %v992_v10 = vmul.f32 %v2079_v63, %v2079_v63  ;;  %v900_v41 = vsel %vm750_vm3, %v2104_v52, 0.0 }
 0x142   : > { %v883_v17 = vadd.f32 %v882_v14, %v881_v59  ;;  %v1080_v45 = vadd.f32 %v1079_v62, %v1078_v11  ;;  %v2302_v2 = vpop.f32.mrf.mxu3  ;;  %v1095_v11 = vsel %vm750_vm3, %v991_v56, 0.0  ;;  %v993_v62 = vmul.f32 %v2104_v52, %v2104_v52 }
 0x143   : > { %813 = vst.msk [vmem:[%s1871_s22 + $0x1f0] sm:$0xff] %vm750_vm3, %v2302_v2 }
 0x144   : > { %v885_v34 = vadd.f32 %v884_v6, %v883_v17  ;;  %v1082_v47 = vadd.f32 %v1081_v46, %v1080_v45  ;;  %v1097_v17 = vsel %vm750_vm3, %v992_v10, 0.0  ;;  %v994_v45 = vmul.f32 %v2129_v21, %v2129_v21 }
 0x145   : > { %v1099_v63 = vsel %vm750_vm3, %v993_v62, 0.0  ;;  %v1002_v10 = vmul.f32 %v2038_v36, %v2038_v36 }
 0x146   : > { %v887_v50 = vadd.f32 %v886_v49, %v885_v34  ;;  %v1084_v16 = vadd.f32 %v1083_v13, %v1082_v47  ;;  %v902_v34 = vsel %vm750_vm3, %v2129_v21, 0.0  ;;  %v995_v47 = vmul.f32 %v2162_v5, %v2162_v5 }
 0x147   : > { %v1101_v49 = vsel %vm750_vm3, %v994_v45, 0.0  ;;  %v906_v21 = vsel %vm750_vm3, %v2192_v54, 0.0 }
 0x148   : > { %v889_v39 = vadd.f32 %v888_v12, %v887_v50  ;;  %v1086_v58 = vadd.f32 %v1085_v33, %v1084_v16  ;;  %v996_v50 = vmul.f32 %v2192_v54, %v2192_v54  ;;  %v1103_v12 = vsel %vm750_vm3, %v995_v47, 0.0 }
 0x149   : > { %v999_v54 = vmul.f32 %v1987_v24, %v1987_v24 }
 0x14a   : > { %v1088_v38 = vadd.f32 %v1087_v60, %v1086_v58  ;;  %v891_v18 = vadd.f32 %v890_v19, %v889_v39  ;;  %v2327_v46 = vpop.f32.mrf.mxu3  ;;  %v998_v60 = vmul.f32 %v1970_v20, %v1970_v20  ;;  %v1105_v5 = vsel %vm750_vm3, %v996_v50, 0.0 }
 0x14b   : > { %814 = vst.msk [vmem:[%s1871_s22 + $0x1f8] sm:$0xff] %vm750_vm3, %v2327_v46  ;;  %v908_v19 = vsel %vm750_vm3, %v2222_v40, 0.0  ;;  %v1000_v40 = vmul.f32 %v2004_v28, %v2004_v28  ;;  %v1111_v56 = vsel %vm750_vm3, %v999_v54, 0.0  ;;  %v1007_v50 = vmul.f32 %v2164_v7, %v2164_v7 }
 0x14c   : > { %v893_v42 = vadd.f32 %v892_v23, %v891_v18  ;;  %v1090_v48 = vadd.f32 %v1089_v57, %v1088_v38  ;;  %v910_v18 = vsel %vm750_vm3, %v1970_v20, 0.0  ;;  %v1107_v57 = vsel %vm750_vm3, %v997_v37, 0.0 }
 0x14d   : > { %v914_v20 = vsel %vm750_vm3, %v2004_v28, 0.0  ;;  %v918_v28 = vsel %vm750_vm3, %v2038_v36, 0.0  ;;  %v922_v36 = vsel %vm750_vm3, %v2081_v0, 0.0 }
 0x14e   : > { %v895_v8 = vadd.f32 %v894_v4, %v893_v42  ;;  %v1092_v31 = vadd.f32 %v1091_v27, %v1090_v48  ;;  %v1109_v42 = vsel %vm750_vm3, %v998_v60, 0.0  ;;  %v912_v48 = vsel %vm750_vm3, %v1987_v24, 0.0 }
 0x14f   : > { %v916_v24 = vsel %vm750_vm3, %v2021_v32, 0.0  ;;  %v1009_v60 = vmul.f32 %v2224_v44, %v2224_v44 }
 0x150   : > { %v897_v9 = vadd.f32 %v896_v51, %v895_v8  ;;  %v1094_v59 = vadd.f32 %v1093_v22, %v1092_v31  ;;  %v1001_v8 = vmul.f32 %v2021_v32, %v2021_v32  ;;  %v1113_v51 = vsel %vm750_vm3, %v1000_v40, 0.0 }
 0x151   : > { %v920_v32 = vsel %vm750_vm3, %v2055_v43, 0.0  ;;  %v1012_v40 = vmul.f32 %v2302_v2, %v2302_v2 }
 0x152   : > { %v899_v14 = vadd.f32 %v898_v35, %v897_v9  ;;  %v1096_v26 = vadd.f32 %v1095_v11, %v1094_v59  ;;  %v1115_v11 = vsel %vm750_vm3, %v1001_v8, 0.0  ;;  %v1003_v35 = vmul.f32 %v2055_v43, %v2055_v43 }
 0x153   : > { %v924_v43 = vsel %vm750_vm3, %v2106_v53, 0.0 }
 0x154   : > { %v901_v6 = vadd.f32 %v900_v41, %v899_v14  ;;  %v1098_v30 = vadd.f32 %v1097_v17, %v1096_v26  ;;  %v1117_v26 = vsel %vm750_vm3, %v1002_v10, 0.0  ;;  %v1004_v17 = vmul.f32 %v2081_v0, %v2081_v0 }
 0x155   : > { %v926_v0 = vsel %vm750_vm3, %v2131_v25, 0.0 }
 0x156   : > { %v1100_v13 = vadd.f32 %v1099_v63, %v1098_v30  ;;  %v903_v52 = vadd.f32 %v902_v34, %v901_v6  ;;  %v1119_v6 = vsel %vm750_vm3, %v1003_v35, 0.0  ;;  %v1005_v30 = vmul.f32 %v2106_v53, %v2106_v53 }
 0x157   : > { %v1121_v47 = vsel %vm750_vm3, %v1004_v17, 0.0  ;;  %v928_v53 = vsel %vm750_vm3, %v2164_v7, 0.0  ;;  %v932_v7 = vsel %vm750_vm3, %v2224_v44, 0.0  ;;  %v936_v44 = vsel %vm750_vm3, %v2277_v3, 0.0 }
 0x158   : > { %v1102_v16 = vadd.f32 %v1101_v49, %v1100_v13  ;;  %v905_v33 = vadd.f32 %v904_v29, %v903_v52  ;;  %v1006_v13 = vmul.f32 %v2131_v25, %v2131_v25  ;;  %v1123_v29 = vsel %vm750_vm3, %v1005_v30, 0.0 }
 0x159   : > { %v930_v25 = vsel %vm750_vm3, %v2194_v55, 0.0 }
 0x15a   : > { %v1104_v39 = vadd.f32 %v1103_v12, %v1102_v16  ;;  %v907_v58 = vadd.f32 %v906_v21, %v905_v33  ;;  %v1125_v12 = vsel %vm750_vm3, %v1006_v13, 0.0  ;;  %v1008_v21 = vmul.f32 %v2194_v55, %v2194_v55 }
 0x15b   : > { %v934_v55 = vsel %vm750_vm3, %v2252_v1, 0.0 }
 0x15c   : > { %v1106_v15 = vadd.f32 %v1105_v5, %v1104_v39  ;;  %v909_v38 = vadd.f32 %v908_v19, %v907_v58  ;;  %v1127_v58 = vsel %vm750_vm3, %v1007_v50, 0.0 }
 0x15e   : > { %v911_v23 = vadd.f32 %v910_v18, %v909_v38  ;;  %v1108_v61 = vadd.f32 %v1107_v57, %v1106_v15  ;;  %v1129_v15 = vsel %vm750_vm3, %v1008_v21, 0.0  ;;  %v1010_v38 = vmul.f32 %v2252_v1, %v2252_v1 }
 0x15f   : > { %v1131_v57 = vsel %vm750_vm3, %v1009_v60, 0.0  ;;  %v938_v1 = vsel %vm750_vm3, %v2302_v2, 0.0 }
 0x160   : > { %v913_v27 = vadd.f32 %v912_v48, %v911_v23  ;;  %v1110_v4 = vadd.f32 %v1109_v42, %v1108_v61  ;;  %v1011_v23 = vmul.f32 %v2277_v3, %v2277_v3  ;;  %v1133_v48 = vsel %vm750_vm3, %v1010_v38, 0.0 }
 0x161   : > { %v1137_v3 = vsel %vm750_vm3, %v1012_v40, 0.0 }
 0x162   : > { %v915_v31 = vadd.f32 %v914_v20, %v913_v27  ;;  %v1112_v22 = vadd.f32 %v1111_v56, %v1110_v4  ;;  %v1135_v56 = vsel %vm750_vm3, %v1011_v23, 0.0  ;;  %v1013_v20 = vmul.f32 %v2327_v46, %v2327_v46 }
 0x164   : > { %v917_v9 = vadd.f32 %v916_v24, %v915_v31  ;;  %v1114_v59 = vadd.f32 %v1113_v51, %v1112_v22  ;;  %v940_v22 = vsel %vm750_vm3, %v2327_v46, 0.0  ;;  %v1139_v10 = vsel %vm750_vm3, %v1013_v20, 0.0 }
 0x166   : > { %v919_v62 = vadd.f32 %v918_v28, %v917_v9  ;;  %v1116_v14 = vadd.f32 %v1115_v11, %v1114_v59 }
 0x168   : > { %v921_v41 = vadd.f32 %v920_v32, %v919_v62  ;;  %v1118_v45 = vadd.f32 %v1117_v26, %v1116_v14 }
 0x16a   : > { %v1120_v63 = vadd.f32 %v1119_v6, %v1118_v45  ;;  %v923_v34 = vadd.f32 %v922_v36, %v921_v41 }
 0x16c   : > { %v925_v52 = vadd.f32 %v924_v43, %v923_v34  ;;  %v1122_v49 = vadd.f32 %v1121_v47, %v1120_v63 }
 0x16e   : > { %v927_v16 = vadd.f32 %v926_v0, %v925_v52  ;;  %v1124_v33 = vadd.f32 %v1123_v29, %v1122_v49 }
 0x170   : > { %v929_v37 = vadd.f32 %v928_v53, %v927_v16  ;;  %v1126_v39 = vadd.f32 %v1125_v12, %v1124_v33 }
 0x172   : > { %v931_v5 = vadd.f32 %v930_v25, %v929_v37  ;;  %v1128_v19 = vadd.f32 %v1127_v58, %v1126_v39 }
 0x174   : > { %v933_v18 = vadd.f32 %v932_v7, %v931_v5  ;;  %v1130_v54 = vadd.f32 %v1129_v15, %v1128_v19 }
 0x176   : > { %v1132_v61 = vadd.f32 %v1131_v57, %v1130_v54  ;;  %v935_v42 = vadd.f32 %v934_v55, %v933_v18 }
 0x178   : > { %v1134_v27 = vadd.f32 %v1133_v48, %v1132_v61  ;;  %v937_v4 = vadd.f32 %v936_v44, %v935_v42 }
 0x17a   : > { %v1136_v8 = vadd.f32 %v1135_v56, %v1134_v27  ;;  %v939_v31 = vadd.f32 %v938_v1, %v937_v4 }
 0x17c   : > { %v1138_v51 = vadd.f32 %v1137_v3, %v1136_v8  ;;  %v941_v24 = vadd.f32 %v940_v22, %v939_v31 }
 0x17e   : > { %v942_v9 = vrot.slane %v941_v24, 4  ;;  %v1140_v59 = vadd.f32 %v1139_v10, %v1138_v51 }
 0x180   : > { %v943_v2 = vadd.f32 %v942_v9, %v941_v24  ;;  %v1141_v11 = vrot.slane %v1140_v59, 4 }
 0x182   : > { %v944_v28 = vrot.slane %v943_v2, 2  ;;  %v1142_v35 = vadd.f32 %v1141_v11, %v1140_v59 }
 0x184   : > { %v945_v62 = vadd.f32 %v944_v28, %v943_v2  ;;  %v1143_v46 = vrot.slane %v1142_v35, 2 }
 0x186   : > { %v946_v14 = vrot.slane %v945_v62, 1  ;;  %v1144_v26 = vadd.f32 %v1143_v46, %v1142_v35 }
 0x188   : > { %v947_v32 = vadd.f32 %v946_v14, %v945_v62  ;;  %v1145_v17 = vrot.slane %v1144_v26, 1 }
 0x18a   : > { %v1146_v41 = vadd.f32 %v1145_v17, %v1144_v26  ;;  %949 = vst.msk [vmem:[%s218_s7] sm:$0x1] %vm948_vm4, %v947_v32 }
 0x18b   : > { %1642 = shalt.err (!%p1639_p8)
}
 0x18c   : > { %1531 = dma.vmem_to_hbm [thread:$0]  (%p1782_p5), %s1173_s8, 16, %s1175_s9, %s1154_s19   ;;  %1147 = vst.msk [vmem:[%s224_s10] sm:$0x1] %vm948_vm4, %v1146_v41 }
 0x18d   : > { %s1158_s30 = scalar_lea.sflag [#allocation7], %s2432_s23  ;;  %s1657_s5 = sshra.s32 %s1188_s12, 4  ;;  %s1658_s5 = int_to_ptr.hbm [resolvable:$true] %s1657_s5 }
 0x18e   : > { %s1659_s6 = scalar_lea.hbm %s1658_s5, 1  ;;  %s1663_s14 = scalar_lea.hbm %s2507_s4, 16 }
 0x18f   : > { %p1660_p9 = scmp.ne.s32.totalorder %s1658_s5, %s1659_s6  ;;  %p1664_p12 = scmp.lt.s32.totalorder %s1658_s5, %s2507_s4 }
 0x190   : > { %p1665_p13 = scmp.lt.s32.totalorder %s1663_s14, %s1659_s6 }
 0x191   : > { %p1661_p10 = pnand %p1660_p9, %p1782_p5 }
 0x192   : > { %p1666_p0 = por %p1665_p13, %p1664_p12 }
 0x193   : > { %p1662_p11 = pneg %p1661_p10 }
 0x195   : > { %p1667_p1 = pnand %p1666_p0, %p1662_p11 }
 0x197   : > { %1670 = shalt.err (!%p1667_p1)
}
 0x198   : > { %1532 = dma.vmem_to_hbm [thread:$0]  (%p1782_p5), %s1186_s11, 16, %s1188_s12, %s1158_s30  }
 0x199 PF: > { %p1548_p2 = scmp.ge.s32.totalorder %s1713_s18, 2  ;;  %s1207_s23 = sand.u32 1, %s1701_s15  }
 0x19a   : > { %s1208_s8 = scalar_lea.sflag [#allocation4], %s1207_s23 }
 0x19b   : > { %p1540_p3 = pnand %p1548_p2, %p1786_p6 }
 0x19d   : > { %p1541_p4 = pneg %p1540_p3 }
 0x19f   : > { %1692 = dma.done.wait (%p1541_p4), %s1208_s8, 16  }
 0x1a0   : > { %1694 = vsyncadd (%p1541_p4), %s1208_s8, 4294967280  ;;  %s1217_s9 = scalar_lea.sflag [#allocation7], %s1207_s23 }
 0x1a1   : > { %1696 = dma.done.wait (%p1541_p4), %s1217_s9, 16  }
 0x1a2   : > { %1698 = vsyncadd (%p1541_p4), %s1217_s9, 4294967280  ;;  %p19_p5 = scmp.ge.s32.totalorder %s1769_s21, 18   ;;  %s2510_s15 = smov %s1705_s16 }
 0x1a3   : > { %s2511_s16 = smov %s1709_s17  ;;  %s2512_s17 = smov %s1780_s24 }
 0x1a4   : > { %s2513_s18 = smov %s1769_s21  ;;  %21 = sbr.rel (!%p19_p5) target bundleno = 6 (0x6), region = 97 }
 0x1a9   :  { %1222 = vsyncpa [#allocation3], 1 }
 0x1aa   :  { %1224 = vsyncpa [#allocation3 + $0x1], 1 }
 0x1ab   :  { %1225 = vsyncpa [#allocation4], 1 }
 0x1ac   :  { %1227 = vsyncpa [#allocation4 + $0x1], 1 }
 0x1ad   :  { %1228 = vsyncpa [#allocation7], 1 }
 0x1ae   :  { %1230 = vsyncpa [#allocation7 + $0x1], 1 }

</bundles_post_ra>
